<compile_context>
chip_gen: v6e
topology: v6e:2x2x1
jax: 0.10.0
libtpu: 0.0.40
codegen_flags: <defaults>
</compile_context>

<pallas_src>
import functools

import jax
import jax.numpy as jnp
from jax import lax
from jax.experimental import pallas as pl
from jax.experimental.pallas import tpu as pltpu

_LANES = 128
_SMOOTH = 1e-6


def _partial_entropy_kernel(yp_ref, yt_ref, ce_ref, cnt_ref, *, n_elems):
    """Accumulates (8,128) f32 partials of the ce-sum and the positive count.

    All elements whose global flat offset is >= n_elems (partial trailing
    blocks, redundant clamped steps, wrapper padding) are masked out, which is
    exactly loss-neutral (0 contribution to both sums).
    """
    c = pl.program_id(0)           # per-core chunk axis ("parallel")
    i = pl.program_id(1)           # reduction axis ("arbitrary")

    @pl.when(i == 0)
    def _():
        ce_ref[...] = jnp.zeros_like(ce_ref)
        cnt_ref[...] = jnp.zeros_like(cnt_ref)

    block_rows = yp_ref.shape[0]               # static, multiple of 8
    groups = block_rows // 8                   # static
    steps_per_chunk = pl.num_programs(1)
    global_step = c * steps_per_chunk + i
    # Flat element offset of the first element of this tile.
    base = global_step * (block_rows * _LANES)

    # Loop-invariant (8,128) intra-group element offsets (hoisted once).
    local_idx = (lax.broadcasted_iota(jnp.int32, (8, _LANES), 0) * _LANES
                 + lax.broadcasted_iota(jnp.int32, (8, _LANES), 1))

    def group_partial(g):
        # One (8,128) = one f32 vreg per input; no large VMEM temporaries.
        r0 = g * 8
        if not isinstance(r0, int):
            r0 = pl.multiple_of(r0, 8)
        yp = yp_ref[pl.ds(r0, 8), :].astype(jnp.float32)
        yt = yt_ref[pl.ds(r0, 8), :].astype(jnp.float32)
        limit = n_elems - base - g * (8 * _LANES)     # scalar
        valid = local_idx < limit
        # Select (not multiply) so garbage/NaN in masked lanes is discarded.
        ce = jnp.where(valid, yt * jnp.log(yp + _SMOOTH), 0.0)
        cnt = jnp.where(jnp.logical_and(valid, yt > 0.0), 1.0, 0.0)
        return ce, cnt

    UNROLL = 8
    main_iters = groups // UNROLL

    ce_acc = jnp.zeros((8, _LANES), jnp.float32)
    cnt_acc = jnp.zeros((8, _LANES), jnp.float32)

    if main_iters > 0:
        def body(j, carry):
            ce_a, cnt_a = carry
            g0 = j * UNROLL
            for u in range(UNROLL):            # manual unroll (static)
                ce, cnt = group_partial(g0 + u)
                ce_a = ce_a + ce
                cnt_a = cnt_a + cnt
            return ce_a, cnt_a
        ce_acc, cnt_acc = lax.fori_loop(0, main_iters, body, (ce_acc, cnt_acc))

    for g in range(main_iters * UNROLL, groups):  # static remainder groups
        ce, cnt = group_partial(g)
        ce_acc = ce_acc + ce
        cnt_acc = cnt_acc + cnt

    ce_ref[0] += ce_acc
    cnt_ref[0] += cnt_acc


def partial_entropy(y_pred, y_true, *, rows_per_tile=4096, core_chunks=1):
    """Pallas implementation of the partial_entropy loss. Returns an f32 scalar.

    core_chunks=2 is useful on multi-TensorCore chips (v7x); keep 1 on v5e/v6e.
    """
    assert y_pred.shape == y_true.shape
    n = int(y_pred.size)
    if n == 0:
        return jnp.zeros((), jnp.float32)

    # bf16/fp16 inputs: double the tile so per-step DMA stays well above the
    # fixed per-grid-step overhead (kernel is purely HBM-bandwidth bound).
    itemsize = max(jnp.dtype(y_pred.dtype).itemsize, jnp.dtype(y_true.dtype).itemsize)
    if itemsize <= 2:
        rows_per_tile *= 2
    rows_per_tile = max(8, (rows_per_tile // 8) * 8)

    rows_arr = pl.cdiv(n, _LANES)
    if n % _LANES == 0 and rows_arr >= 8:
        # Common case: zero-copy lane-dense view.
        rows = rows_arr
        yp2 = y_pred.reshape(rows, _LANES)
        yt2 = y_true.reshape(rows, _LANES)
    else:
        # Fallback only when n is not a multiple of 128 (or is tiny): pad to
        # the next (8,128)-aligned slab.  Pad values are loss-neutral and are
        # additionally masked in-kernel.
        rows = max(8, pl.cdiv(rows_arr, 8) * 8)
        pad = rows * _LANES - n
        yp2 = jnp.pad(y_pred.reshape(-1), (0, pad)).reshape(rows, _LANES)
        yt2 = jnp.pad(y_true.reshape(-1), (0, pad)).reshape(rows, _LANES)

    block_rows = min(rows_per_tile, (rows // 8) * 8)      # multiple of 8, <= rows
    steps_total = pl.cdiv(rows, block_rows)               # last block may be partial
    chunks = max(1, min(int(core_chunks), steps_total))
    steps_per_chunk = pl.cdiv(steps_total, chunks)

    # Clamp the block index so redundant steps (uneven chunk split) never DMA
    # out of range; the kernel masks their contribution to zero via n_elems.
    def in_map(c, i):
        return (jnp.minimum(c * steps_per_chunk + i, steps_total - 1), 0)

    def out_map(c, i):
        return (c, 0, 0)

    kernel = functools.partial(_partial_entropy_kernel, n_elems=n)

    ce_out, cnt_out = pl.pallas_call(
        kernel,
        out_shape=(
            jax.ShapeDtypeStruct((chunks, 8, _LANES), jnp.float32),
            jax.ShapeDtypeStruct((chunks, 8, _LANES), jnp.float32),
        ),
        grid_spec=pltpu.PrefetchScalarGridSpec(
            num_scalar_prefetch=0,
            grid=(chunks, steps_per_chunk),
            in_specs=[
                pl.BlockSpec((block_rows, _LANES), in_map),
                pl.BlockSpec((block_rows, _LANES), in_map),
            ],
            out_specs=[
                pl.BlockSpec((1, 8, _LANES), out_map),
                pl.BlockSpec((1, 8, _LANES), out_map),
            ],
        ),
        compiler_params=pltpu.CompilerParams(
            dimension_semantics=("parallel", "arbitrary"),
            vmem_limit_bytes=32 * 1024 * 1024,
        ),
    )(yp2, yt2)

    ce_sum = jnp.sum(ce_out)
    cnt_sum = jnp.sum(cnt_out)
    return -ce_sum / (1.0 + cnt_sum)


def _partial_entropy_ref(y_pred, y_true):
    smooth = 1e-6
    yp = y_pred.astype(jnp.float32)
    yt = y_true.astype(jnp.float32)
    count = jnp.sum(jnp.where(yt > 0, 1.0, 0.0))
    return -jnp.sum(yt * jnp.log(yp + smooth)) / (1.0 + count)


def _make_inputs(key, shape, dtype=jnp.float32):
    k1, k2 = jax.random.split(key)
    y_pred = jax.nn.softmax(jax.random.normal(k1, shape, jnp.float32), axis=1).astype(dtype)
    y_true = jnp.where(jax.random.uniform(k2, shape) > 0.7, 1.0, 0.0).astype(dtype)
    return y_pred, y_true


if __name__ == "__main__":
    key = jax.random.PRNGKey(0)
    keys = jax.random.split(key, 5)

    def check(out, ref, rtol=5e-5, atol=1e-5):
        assert jnp.allclose(out, ref, rtol=rtol, atol=atol), (out, ref)

    # 1) Canonical NCHW case: n % 128 == 0 -> zero-copy reshape, single tile.
    yp, yt = _make_inputs(keys[0], (2, 4, 16, 16))
    out = jax.block_until_ready(partial_entropy(yp, yt))
    check(out, _partial_entropy_ref(yp, yt))

    # 2) Odd element count (n % 128 != 0): small pad fallback + in-kernel mask.
    yp, yt = _make_inputs(keys[1], (2, 3, 7, 5))
    out = jax.block_until_ready(partial_entropy(yp, yt))
    check(out, _partial_entropy_ref(yp, yt))

    # 3) Multi-step reduction, uneven 2-way chunk split (clamped redundant
    #    step on the second chunk, masked to zero in-kernel).
    yp, yt = _make_inputs(keys[2], (2, 4, 16, 24))   # 3072 elems -> 24 rows
    out = jax.block_until_ready(partial_entropy(yp, yt, rows_per_tile=8, core_chunks=2))
    check(out, _partial_entropy_ref(yp, yt))

    # 4) Partial trailing row-block handled purely by in-kernel masking
    #    (no pad copy), split over the 2-way parallel axis.
    yp, yt = _make_inputs(keys[3], (2, 4, 16, 20))   # 2560 elems -> 20 rows
    out = jax.block_until_ready(partial_entropy(yp, yt, rows_per_tile=16, core_chunks=2))
    check(out, _partial_entropy_ref(yp, yt))

    # 5) bf16 inputs consumed natively (halved HBM traffic), upcast in-kernel.
    yp, yt = _make_inputs(keys[4], (2, 4, 16, 16), dtype=jnp.bfloat16)
    out = jax.block_until_ready(partial_entropy(yp, yt))
    check(out, _partial_entropy_ref(yp, yt), rtol=1e-4, atol=1e-4)

    print("KERNEL_OK")
</pallas_src>

<mosaic_0001>
module attributes {stable_mosaic.version = 11 : i64} {
  func.func @_partial_entropy_kernel(%arg0: i32, %arg1: i32, %arg2: memref<16x128xf32, #tpu.memory_space<vmem>>, %arg3: memref<16x128xf32, #tpu.memory_space<vmem>>, %arg4: memref<1x8x128xf32, #tpu.memory_space<vmem>>, %arg5: memref<1x8x128xf32, #tpu.memory_space<vmem>>) attributes {dimension_semantics = [#tpu.dimension_semantics<parallel>, #tpu.dimension_semantics<arbitrary>], iteration_bounds = array<i64: 1, 1>, scalar_prefetch = 0 : i64, scratch_operands = 0 : i64, tpu.core_type = #tpu.core_type<tc>, window_params = [{transform_indices = @transform_0, window_bounds = array<i64: 16, 128>}, {transform_indices = @transform_1, window_bounds = array<i64: 16, 128>}, {transform_indices = @transform_2, window_bounds = array<i64: 1, 8, 128>}, {transform_indices = @transform_3, window_bounds = array<i64: 1, 8, 128>}]} {
    %c0_i32 = arith.constant 0 : i32
    %0 = arith.cmpi eq, %arg1, %c0_i32 : i32
    %1 = arith.extui %0 : i1 to i32
    %c0_i32_0 = arith.constant 0 : i32
    %2 = arith.cmpi ne, %1, %c0_i32_0 : i32
    scf.if %2 {
      %cst_33 = arith.constant 0.000000e+00 : f32
      %65 = vector.broadcast %cst_33 : f32 to vector<1x8x128xf32>
      %c0_34 = arith.constant 0 : index
      %c0_35 = arith.constant 0 : index
      %c0_36 = arith.constant 0 : index
      %66 = vector.load %arg4[%c0_34, %c0_35, %c0_36] : memref<1x8x128xf32, #tpu.memory_space<vmem>>, vector<1x8x128xf32>
      tpu.vector_store %arg4[%c0_34, %c0_35, %c0_36], %65 {strides = array<i32>} : memref<1x8x128xf32, #tpu.memory_space<vmem>>, vector<1x8x128xf32>,
      %cst_37 = arith.constant 0.000000e+00 : f32
      %67 = vector.broadcast %cst_37 : f32 to vector<1x8x128xf32>
      %c0_38 = arith.constant 0 : index
      %c0_39 = arith.constant 0 : index
      %c0_40 = arith.constant 0 : index
      %68 = vector.load %arg5[%c0_38, %c0_39, %c0_40] : memref<1x8x128xf32, #tpu.memory_space<vmem>>, vector<1x8x128xf32>
      tpu.vector_store %arg5[%c0_38, %c0_39, %c0_40], %67 {strides = array<i32>} : memref<1x8x128xf32, #tpu.memory_space<vmem>>, vector<1x8x128xf32>,
    } else {
    }
    %c1_i32 = arith.constant 1 : i32
    %3 = arith.muli %arg0, %c1_i32 : i32
    %4 = arith.addi %3, %arg1 : i32
    %c2048_i32 = arith.constant 2048 : i32
    %5 = arith.muli %4, %c2048_i32 : i32
    %6 = tpu.iota {dimensions = array<i32: 0>} : vector<8x128xi32>
    %c128_i32 = arith.constant 128 : i32
    %7 = vector.broadcast %c128_i32 : i32 to vector<8x128xi32>
    %8 = arith.muli %6, %7 : vector<8x128xi32>
    %9 = tpu.iota {dimensions = array<i32: 1>} : vector<8x128xi32>
    %10 = arith.addi %8, %9 : vector<8x128xi32>
    %cst = arith.constant 0.000000e+00 : f32
    %11 = vector.broadcast %cst : f32 to vector<8x128xf32>
    %cst_1 = arith.constant 0.000000e+00 : f32
    %12 = vector.broadcast %cst_1 : f32 to vector<8x128xf32>
    %c0 = arith.constant 0 : index
    %c0_2 = arith.constant 0 : index
    %13 = vector.load %arg2[%c0, %c0_2] : memref<16x128xf32, #tpu.memory_space<vmem>>, vector<8x128xf32>
    %c0_3 = arith.constant 0 : index
    %c0_4 = arith.constant 0 : index
    %14 = vector.load %arg3[%c0_3, %c0_4] : memref<16x128xf32, #tpu.memory_space<vmem>>, vector<8x128xf32>
    %c2048_i32_5 = arith.constant 2048 : i32
    %15 = arith.subi %c2048_i32_5, %5 : i32
    %c0_i32_6 = arith.constant 0 : i32
    %16 = arith.subi %15, %c0_i32_6 : i32
    %17 = vector.broadcast %16 : i32 to vector<8x128xi32>
    %18 = arith.cmpi slt, %10, %17 : vector<8x128xi32>
    %cst_7 = arith.constant 9.99999997E-7 : f32
    %19 = vector.broadcast %cst_7 : f32 to vector<8x128xf32>
    %20 = arith.addf %13, %19 : vector<8x128xf32>
    %21 = math.log %20 : vector<8x128xf32>
    %22 = arith.mulf %14, %21 : vector<8x128xf32>
    %cst_8 = arith.constant 0.000000e+00 : f32
    %23 = vector.broadcast %cst_8 : f32 to vector<8x128xf32>
    %24 = arith.select %18, %22, %23 : vector<8x128xi1>, vector<8x128xf32>
    %cst_9 = arith.constant 0.000000e+00 : f32
    %25 = vector.broadcast %cst_9 : f32 to vector<8x128xf32>
    %26 = arith.cmpf ogt, %14, %25 : vector<8x128xf32>
    %27 = arith.andi %18, %26 : vector<8x128xi1>
    %cst_10 = arith.constant 1.000000e+00 : f32
    %cst_11 = arith.constant 0.000000e+00 : f32
    %28 = vector.broadcast %cst_10 : f32 to vector<8x128xf32>
    %29 = vector.broadcast %cst_11 : f32 to vector<8x128xf32>
    %30 = arith.select %27, %28, %29 : vector<8x128xi1>, vector<8x128xf32>
    %31 = arith.addf %11, %24 : vector<8x128xf32>
    %32 = arith.addf %12, %30 : vector<8x128xf32>
    %c8 = arith.constant 8 : index
    %c0_12 = arith.constant 0 : index
    %33 = vector.load %arg2[%c8, %c0_12] : memref<16x128xf32, #tpu.memory_space<vmem>>, vector<8x128xf32>
    %c8_13 = arith.constant 8 : index
    %c0_14 = arith.constant 0 : index
    %34 = vector.load %arg3[%c8_13, %c0_14] : memref<16x128xf32, #tpu.memory_space<vmem>>, vector<8x128xf32>
    %c2048_i32_15 = arith.constant 2048 : i32
    %35 = arith.subi %c2048_i32_15, %5 : i32
    %c1024_i32 = arith.constant 1024 : i32
    %36 = arith.subi %35, %c1024_i32 : i32
    %37 = vector.broadcast %36 : i32 to vector<8x128xi32>
    %38 = arith.cmpi slt, %10, %37 : vector<8x128xi32>
    %cst_16 = arith.constant 9.99999997E-7 : f32
    %39 = vector.broadcast %cst_16 : f32 to vector<8x128xf32>
    %40 = arith.addf %33, %39 : vector<8x128xf32>
    %41 = math.log %40 : vector<8x128xf32>
    %42 = arith.mulf %34, %41 : vector<8x128xf32>
    %cst_17 = arith.constant 0.000000e+00 : f32
    %43 = vector.broadcast %cst_17 : f32 to vector<8x128xf32>
    %44 = arith.select %38, %42, %43 : vector<8x128xi1>, vector<8x128xf32>
    %cst_18 = arith.constant 0.000000e+00 : f32
    %45 = vector.broadcast %cst_18 : f32 to vector<8x128xf32>
    %46 = arith.cmpf ogt, %34, %45 : vector<8x128xf32>
    %47 = arith.andi %38, %46 : vector<8x128xi1>
    %cst_19 = arith.constant 1.000000e+00 : f32
    %cst_20 = arith.constant 0.000000e+00 : f32
    %48 = vector.broadcast %cst_19 : f32 to vector<8x128xf32>
    %49 = vector.broadcast %cst_20 : f32 to vector<8x128xf32>
    %50 = arith.select %47, %48, %49 : vector<8x128xi1>, vector<8x128xf32>
    %51 = arith.addf %31, %44 : vector<8x128xf32>
    %52 = arith.addf %32, %50 : vector<8x128xf32>
    %c0_21 = arith.constant 0 : index
    %c0_22 = arith.constant 0 : index
    %c0_23 = arith.constant 0 : index
    %53 = vector.load %arg4[%c0_21, %c0_22, %c0_23] : memref<1x8x128xf32, #tpu.memory_space<vmem>>, vector<1x8x128xf32>
    %54 = vector.shape_cast %53 : vector<1x8x128xf32> to vector<8x128xf32>
    %55 = arith.addf %54, %51 : vector<8x128xf32>
    %c0_24 = arith.constant 0 : index
    %c0_25 = arith.constant 0 : index
    %c0_26 = arith.constant 0 : index
    %56 = vector.load %arg4[%c0_24, %c0_25, %c0_26] : memref<1x8x128xf32, #tpu.memory_space<vmem>>, vector<1x8x128xf32>
    %57 = vector.shape_cast %56 : vector<1x8x128xf32> to vector<8x128xf32>
    %58 = vector.shape_cast %55 : vector<8x128xf32> to vector<1x8x128xf32>
    tpu.vector_store %arg4[%c0_24, %c0_25, %c0_26], %58 {strides = array<i32>} : memref<1x8x128xf32, #tpu.memory_space<vmem>>, vector<1x8x128xf32>,
    %c0_27 = arith.constant 0 : index
    %c0_28 = arith.constant 0 : index
    %c0_29 = arith.constant 0 : index
    %59 = vector.load %arg5[%c0_27, %c0_28, %c0_29] : memref<1x8x128xf32, #tpu.memory_space<vmem>>, vector<1x8x128xf32>
    %60 = vector.shape_cast %59 : vector<1x8x128xf32> to vector<8x128xf32>
    %61 = arith.addf %60, %52 : vector<8x128xf32>
    %c0_30 = arith.constant 0 : index
    %c0_31 = arith.constant 0 : index
    %c0_32 = arith.constant 0 : index
    %62 = vector.load %arg5[%c0_30, %c0_31, %c0_32] : memref<1x8x128xf32, #tpu.memory_space<vmem>>, vector<1x8x128xf32>
    %63 = vector.shape_cast %62 : vector<1x8x128xf32> to vector<8x128xf32>
    %64 = vector.shape_cast %61 : vector<8x128xf32> to vector<1x8x128xf32>
    tpu.vector_store %arg5[%c0_30, %c0_31, %c0_32], %64 {strides = array<i32>} : memref<1x8x128xf32, #tpu.memory_space<vmem>>, vector<1x8x128xf32>,
    return
  }
  func.func @transform_0(%arg0: i32, %arg1: i32) -> (i32, i32) {
    %c1_i32 = arith.constant 1 : i32
    %0 = arith.muli %arg0, %c1_i32 : i32
    %1 = arith.addi %0, %arg1 : i32
    %c0_i32 = arith.constant 0 : i32
    %2 = arith.minsi %1, %c0_i32 : i32
    %c0_i32_0 = arith.constant 0 : i32
    %c0_i32_1 = arith.constant 0 : i32
    return %2, %c0_i32_0 : i32, i32
  }
  func.func @transform_1(%arg0: i32, %arg1: i32) -> (i32, i32) {
    %c1_i32 = arith.constant 1 : i32
    %0 = arith.muli %arg0, %c1_i32 : i32
    %1 = arith.addi %0, %arg1 : i32
    %c0_i32 = arith.constant 0 : i32
    %2 = arith.minsi %1, %c0_i32 : i32
    %c0_i32_0 = arith.constant 0 : i32
    %c0_i32_1 = arith.constant 0 : i32
    return %2, %c0_i32_0 : i32, i32
  }
  func.func @transform_2(%arg0: i32, %arg1: i32) -> (i32, i32, i32) {
    %c0_i32 = arith.constant 0 : i32
    %c0_i32_0 = arith.constant 0 : i32
    %c0_i32_1 = arith.constant 0 : i32
    return %arg0, %c0_i32, %c0_i32_0 : i32, i32, i32
  }
  func.func @transform_3(%arg0: i32, %arg1: i32) -> (i32, i32, i32) {
    %c0_i32 = arith.constant 0 : i32
    %c0_i32_0 = arith.constant 0 : i32
    %c0_i32_1 = arith.constant 0 : i32
    return %arg0, %c0_i32, %c0_i32_0 : i32, i32, i32
  }
}

</mosaic_0001>

<bundles_post_ra>
// kernel: tpu_custom_call.1
= control target key start
LH: loop header
LB: loop body
LE: loop exit
PB: predicated region body
PF: predicated region fallthrough
CT: control target
= control target key end

     0   :  { %9 = vsyncpa [#allocation3], 0  ;;  %s289_s0 = inlined_call_operand.hbm [shape: f32[16,128], index: 0, kind: input, shape index: {}]   ;;  %s290_s1 = inlined_call_operand.hbm [shape: f32[16,128], index: 1, kind: input, shape index: {}]   ;;  %s291_s2 = inlined_call_operand.hbm [shape: f32[1,8,128], index: 2, kind: output, shape index: {0}]   ;;  %s292_s3 = inlined_call_operand.hbm [shape: f32[1,8,128], index: 3, kind: output, shape index: {1}]  }
   0x1   :  { %10 = vsyncpa [#allocation6], 0 }
   0x2   :  { %11 = vsyncpa [#allocation4], 0 }
   0x3   :  { %12 = vsyncpa [#allocation9], 0  ;;  %s246_s12 = smov [#allocation2]  }
   0x4   :  { %s24_s13 = sshll.u32 %s246_s12, 4  ;;  %s25_s13 = int_to_ptr.vmem [resolvable:$true] %s24_s13 }
   0x5   :  { %s166_s14 = scalar_lea.vmem %s25_s13, 256  ;;  %p171_p1 = scmp.lt.s32.totalorder %s25_s13, %s25_s13 }
   0x6   :  { %p167_p0 = scmp.ne.s32.totalorder %s25_s13, %s166_s14  ;;  %p172_p2 = scmp.lt.s32.totalorder %s166_s14, %s166_s14 }
   0x8   :  { %p173_p3 = por %p172_p2, %p171_p1 }
   0xa   :  { %p174_p4 = pnand %p173_p3, %p167_p0 }
   0xc   :  { %177 = shalt.err (!%p174_p4)
}
   0xd   :  { %s247_s15 = smov 128   ;;  %s248_s16 = smov 8  }
   0xe   :  { %30 = dma.hbm_to_vmem [thread:$0]  %s289_s0, 256, %s25_s13, [#allocation3], %s247_s15, %s247_s15, %s248_s16  }
   0xf   :  { %s249_s19 = smov [#allocation5]  }
  0x10   :  { %s42_s20 = sshll.u32 %s249_s19, 4  ;;  %s43_s20 = int_to_ptr.vmem [resolvable:$true] %s42_s20 }
  0x11   :  { %s186_s21 = scalar_lea.vmem %s43_s20, 256  ;;  %p191_p6 = scmp.lt.s32.totalorder %s43_s20, %s43_s20 }
  0x12   :  { %p187_p5 = scmp.ne.s32.totalorder %s43_s20, %s186_s21  ;;  %p192_p7 = scmp.lt.s32.totalorder %s186_s21, %s186_s21 }
  0x14   :  { %p193_p8 = por %p192_p7, %p191_p6 }
  0x16   :  { %p194_p9 = pnand %p193_p8, %p187_p5 }
  0x18   :  { %197 = shalt.err (!%p194_p9)
}
  0x19   :  { %48 = dma.hbm_to_vmem [thread:$0]  %s290_s1, 256, %s43_s20, [#allocation6], %s247_s15, %s247_s15, %s248_s16  }
  0x1a   :  { %238 = dma.done.wait [#allocation3], 256  }
  0x1b   :  { %239 = vsyncadd [#allocation3], 4294967040 }
  0x1c   :  { %240 = dma.done.wait [#allocation6], 256  }
  0x1d   :  { %241 = vsyncadd [#allocation6], 4294967040  ;;  %v71_v0 = vlaneseq  ;;  %v77_v5 = vld [vmem:[#allocation2] sm:$0xff]  ;;  %v78_v6 = vld [vmem:[#allocation5] sm:$0xff]  ;;  %v250_v11 = vmov 0.0   ;;  %s251_s0 = smov [#allocation8]  }
  0x1e   :  { %v92_v7 = vld [vmem:[#allocation2 + $0x8] sm:$0xff]  ;;  %v82_v8 = vadd.f32 1e-06, %v77_v5  ;;  %v93_v9 = vld [vmem:[#allocation5 + $0x8] sm:$0xff]  ;;  %vm87_vm2 = vcmp.gt.f32.partialorder %v78_v6, 0.0  ;;  %s129_s1 = sshll.u32 %s251_s0, 4  ;;  %s130_s1 = int_to_ptr.vmem [resolvable:$true] %s129_s1 }
  0x1f   :  { %v72_v1 = vshrl.u32 %v71_v0, 7  ;;  %v75_v2 = vand.u32 127, %v71_v0  ;;  %v97_v10 = vadd.f32 1e-06, %v92_v7  ;;  %vm102_vm4 = vcmp.gt.f32.partialorder %v93_v9, 0.0  ;;  %s198_s24 = scalar_lea.vmem %s130_s1, 128  ;;  %p203_p11 = scmp.lt.s32.totalorder %s130_s1, %s130_s1 }
  0x20   :  { %154 = vlog2.f32 %v82_v8  ;;  %p199_p10 = scmp.ne.s32.totalorder %s130_s1, %s198_s24  ;;  %p204_p12 = scmp.lt.s32.totalorder %s198_s24, %s198_s24 }
  0x21   :  { %v73_v3 = vmul.u32 128, %v72_v1  ;;  %156 = vlog2.f32 %v97_v10 }
  0x22   :  { %p205_p13 = por %p204_p12, %p203_p11 }
  0x23   :  { %v76_v4 = vadd.s32 %v75_v2, %v73_v3 }
  0x24   :  { %p206_p0 = pnand %p205_p13, %p199_p10 }
  0x25   :  { %vm81_vm0 = vcmp.lt.s32.totalorder %v76_v4, 2048  ;;  %vm96_vm1 = vcmp.lt.s32.totalorder %v76_v4, 1024 }
  0x26   :  { %vm88_vm3 = vmand %vm81_vm0, %vm87_vm2 }
  0x27   :  { %v89_v12 = vsel %vm88_vm3, 1.0, %v250_v11  ;;  %vm103_vm5 = vmand %vm96_vm1, %vm102_vm4 }
  0x28   :  { %v104_v13 = vsel %vm103_vm5, 1.0, %v250_v11 }
  0x29   :  { %v106_v14 = vadd.f32 %v104_v13, %v89_v12 }
  0x2b   :  { %112 = vst [vmem:[#allocation8] sm:$0xff] %v106_v14 }
  0x2c   :  { %209 = shalt.err (!%p206_p0)
}
  0x2d   :  { %132 = dma.vmem_to_hbm [thread:$0]  %s130_s1, 128, %s292_s3, [#allocation9]   ;;  %v155_v15 = vpop.eup %154 }
  0x2e   :  { %v157_v16 = vpop.eup %156  ;;  %v84_v17 = vmul.f32 0.6931472, %v155_v15  ;;  %s252_s27 = smov [#allocation7]  }
  0x2f   :  { %v99_v18 = vmul.f32 0.6931472, %v157_v16  ;;  %s119_s28 = sshll.u32 %s252_s27, 4  ;;  %s120_s28 = int_to_ptr.vmem [resolvable:$true] %s119_s28 }
  0x30   :  { %v85_v19 = vmul.f32 %v84_v17, %v78_v6  ;;  %s218_s29 = scalar_lea.vmem %s120_s28, 128  ;;  %p223_p2 = scmp.lt.s32.totalorder %s120_s28, %s120_s28 }
  0x31   :  { %v100_v20 = vmul.f32 %v99_v18, %v93_v9  ;;  %p219_p1 = scmp.ne.s32.totalorder %s120_s28, %s218_s29  ;;  %p224_p3 = scmp.lt.s32.totalorder %s218_s29, %s218_s29 }
  0x32   :  { %v86_v21 = vsel %vm81_vm0, %v85_v19, 0.0 }
  0x33   :  { %v101_v22 = vsel %vm96_vm1, %v100_v20, 0.0  ;;  %p225_p4 = por %p224_p3, %p223_p2 }
  0x34   :  { %v105_v23 = vadd.f32 %v101_v22, %v86_v21 }
  0x35   :  { %p226_p5 = pnand %p225_p4, %p219_p1 }
  0x36   :  { %109 = vst [vmem:[#allocation7] sm:$0xff] %v105_v23 }
  0x37   :  { %229 = shalt.err (!%p226_p5)
}
  0x38   :  { %122 = dma.vmem_to_hbm [thread:$0]  %s120_s28, 128, %s291_s2, [#allocation4]  }
  0x39   :  { %242 = dma.done.wait [#allocation4], 128  }
  0x3a   :  { %243 = vsyncadd [#allocation4], 4294967168 }
  0x3b   :  { %244 = dma.done.wait [#allocation9], 128  }
  0x3c   :  { %245 = vsyncadd [#allocation9], 4294967168 }
  0x3d   :  { %139 = vsyncpa [#allocation3], 1 }
  0x3e   :  { %140 = vsyncpa [#allocation6], 1 }
  0x3f   :  { %141 = vsyncpa [#allocation4], 1 }
  0x40   :  { %142 = vsyncpa [#allocation9], 1 }

</bundles_post_ra>
